<compile_context>
chip_gen: v5e
topology: v5e:2x2
jax: 0.10.0
libtpu: 0.0.40
codegen_flags: <defaults>
</compile_context>

<pallas_src>
import functools

import jax
import jax.numpy as jnp
from jax.experimental import pallas as pl
from jax.experimental.pallas import tpu as pltpu


def _round_up(x: int, m: int) -> int:
    return (x + m - 1) // m * m


def _cdiv(a: int, b: int) -> int:
    return (a + b - 1) // b


def _two_input_linear_kernel(x1_ref, x2_ref, w1_ref, w2_ref, o_ref, *, k_steps):
    """One K-step of out = x1 @ w1 + x2 @ w2, accumulating directly in o_ref."""
    partial = jnp.dot(x1_ref[...], w1_ref[...], preferred_element_type=jnp.float32)
    partial = partial + jnp.dot(
        x2_ref[...], w2_ref[...], preferred_element_type=jnp.float32
    )

    if k_steps == 1:
        # Fast path: no init / accumulate / finalize overhead around one MXU pass.
        o_ref[...] = partial.astype(o_ref.dtype)
    else:
        k = pl.program_id(2)

        @pl.when(k == 0)
        def _init():
            o_ref[...] = partial.astype(o_ref.dtype)

        @pl.when(k > 0)
        def _accum():
            o_ref[...] += partial.astype(o_ref.dtype)


def two_input_linear_pallas(x1_2d, x2_2d, w1, w2, *, compute_dtype=None):
    """out = x1_2d @ w1 + x2_2d @ w2 via a tiled, lane-dense Pallas matmul."""
    M, K = x1_2d.shape
    Kw, N = w1.shape
    assert x2_2d.shape == (M, K) and w2.shape == (Kw, N) and K == Kw

    # Optional bf16 compute path (accumulation stays f32 inside the kernel).
    if compute_dtype is not None and compute_dtype != x1_2d.dtype:
        x1_2d = x1_2d.astype(compute_dtype)
        x2_2d = x2_2d.astype(compute_dtype)
        w1 = w1.astype(compute_dtype)
        w2 = w2.astype(compute_dtype)

    in_dtype = x1_2d.dtype
    in_itemsize = jnp.dtype(in_dtype).itemsize
    sub = 16 if in_itemsize < 4 else 8  # bf16 min tile is (16, 128)

    # Minimum lane/sublane-aligned problem dims.
    Ma, Ka, Na = _round_up(M, sub), _round_up(K, 128), _round_up(N, 128)

    # --- per-generation VMEM-aware tile selection ---
    try:
        vmem_cap = int(pltpu.get_tpu_info().vmem_capacity_bytes)
    except Exception:  # pragma: no cover - conservative fallback (v7x per-TC)
        vmem_cap = 64 * 1024 * 1024
    budget = min(vmem_cap // 2, 56 * 1024 * 1024)

    tm = min(512 if in_itemsize < 4 else 256, Ma)
    tn = min(1024, Na)
    tk = min(512, Ka)

    def _vmem_bytes(tm_, tn_, tk_):
        # 2 activation blocks + 2 weight blocks, double-buffered each,
        # plus the f32 output block (double-buffered across (i, j) changes).
        return ((2 * 2 * tm_ * tk_ + 2 * 2 * tk_ * tn_) * in_itemsize
                + 2 * tm_ * tn_ * 4)

    while _vmem_bytes(tm, tn, tk) > budget:
        if tn > 128:
            tn = max(128, (tn // 2) // 128 * 128)
        elif tk > 128:
            tk = max(128, (tk // 2) // 128 * 128)
        elif tm > sub:
            tm = max(sub, (tm // 2) // sub * sub)
        else:
            break

    Mp, Kp, Np = _round_up(M, tm), _round_up(K, tk), _round_up(N, tn)

    # Keep both TensorCores busy on multi-core chips: avoid a (1, 1, K) grid.
    if (Mp // tm) * (Np // tn) < 2:
        if Np > 128:                       # prefer splitting N
            tn = 128 * _cdiv(Np // 128, 2)
            Np = _round_up(N, tn)
        elif Mp > sub:                     # otherwise split M
            tm = sub * max(1, (Mp // sub) // 2)
            Mp = _round_up(M, tm)

    # Zero-pad: K-padding contributes exactly 0; M/N padding is sliced off.
    x1_p = x1_2d if (Mp == M and Kp == K) else jnp.pad(
        x1_2d, ((0, Mp - M), (0, Kp - K)))
    x2_p = x2_2d if (Mp == M and Kp == K) else jnp.pad(
        x2_2d, ((0, Mp - M), (0, Kp - K)))
    w1_p = w1 if (Kp == K and Np == N) else jnp.pad(
        w1, ((0, Kp - K), (0, Np - N)))
    w2_p = w2 if (Kp == K and Np == N) else jnp.pad(
        w2, ((0, Kp - K), (0, Np - N)))

    grid = (Mp // tm, Np // tn, Kp // tk)
    n_i, n_j, k_steps = grid

    # Advisory cost estimate; bytes account for operand re-streaming at grid>1.
    cost = pl.CostEstimate(
        flops=2 * 2 * Mp * Kp * Np,
        transcendentals=0,
        bytes_accessed=(2 * Mp * Kp * n_j + 2 * Kp * Np * n_i) * in_itemsize
        + Mp * Np * 4,
    )

    kernel = functools.partial(_two_input_linear_kernel, k_steps=k_steps)

    out_p = pl.pallas_call(
        kernel,
        out_shape=jax.ShapeDtypeStruct((Mp, Np), jnp.float32),
        grid=grid,
        in_specs=[
            pl.BlockSpec((tm, tk), lambda i, j, k: (i, k)),
            pl.BlockSpec((tm, tk), lambda i, j, k: (i, k)),
            # TODO(synk): on v5e at large K, consider pipeline_mode=pl.Buffered(3)
            # on the weight specs if profiling shows exposed DMA waits.
            pl.BlockSpec((tk, tn), lambda i, j, k: (k, j)),
            pl.BlockSpec((tk, tn), lambda i, j, k: (k, j)),
        ],
        out_specs=pl.BlockSpec((tm, tn), lambda i, j, k: (i, j)),
        compiler_params=pltpu.CompilerParams(
            dimension_semantics=("parallel", "parallel", "arbitrary"),
            vmem_limit_bytes=int(min(vmem_cap * 3 // 4, 96 * 1024 * 1024)),
        ),
        cost_estimate=cost,
    )(x1_p, x2_p, w1_p, w2_p)

    if Mp != M or Np != N:
        out_p = out_p[:M, :N]
    return out_p


def freeze_gradients_forward(x1, x2, w1, w2, *, compute_dtype=None):
    """FreezeGradients.forward: run the wrapped TwoInputLinear with gradients
    stopped (torch.no_grad() => lax.stop_gradient on the forward result)."""
    B, S, H = x1.shape
    out_2d = two_input_linear_pallas(
        x1.reshape(B * S, H),
        x2.reshape(B * S, H),
        w1,
        w2,
        compute_dtype=compute_dtype,
    )
    out = out_2d.reshape(B, S, -1).astype(x1.dtype)
    return jax.lax.stop_gradient(out)


if __name__ == "__main__":
    # Small shapes implied by the two-input sequence module:
    # batch=2, seq=8, hidden=32.
    B, S, H = 2, 8, 32

    key = jax.random.PRNGKey(0)
    k1, k2, k3, k4 = jax.random.split(key, 4)

    x1 = jax.random.normal(k1, (B, S, H), dtype=jnp.float32)
    x2 = jax.random.normal(k2, (B, S, H), dtype=jnp.float32)
    w1 = jax.random.normal(k3, (H, H), dtype=jnp.float32) * 0.05
    w2 = jax.random.normal(k4, (H, H), dtype=jnp.float32) * 0.05

    # f32 compute for the tight-tolerance self-test; at real sizes pass
    # compute_dtype=jnp.bfloat16 for 2-4x MXU throughput.
    out = freeze_gradients_forward(x1, x2, w1, w2)
    out = jax.block_until_ready(out)

    # Reference check (plain JAX) — same no_grad forward semantics.
    ref = x1.reshape(B * S, H) @ w1 + x2.reshape(B * S, H) @ w2
    ref = ref.reshape(B, S, H)
    assert out.shape == (B, S, H)
    assert jnp.allclose(out, ref, atol=2e-5, rtol=2e-5)

    print("KERNEL_OK")
</pallas_src>

<mosaic_0001>
module attributes {stable_mosaic.version = 11 : i64} {
  func.func @_two_input_linear_kernel(%arg0: i32, %arg1: i32, %arg2: i32, %arg3: memref<8x128xf32, #tpu.memory_space<vmem>>, %arg4: memref<8x128xf32, #tpu.memory_space<vmem>>, %arg5: memref<128x128xf32, #tpu.memory_space<vmem>>, %arg6: memref<128x128xf32, #tpu.memory_space<vmem>>, %arg7: memref<8x128xf32, #tpu.memory_space<vmem>>) attributes {dimension_semantics = [#tpu.dimension_semantics<parallel>, #tpu.dimension_semantics<parallel>, #tpu.dimension_semantics<arbitrary>], iteration_bounds = array<i64: 2, 1, 1>, scalar_prefetch = 0 : i64, scratch_operands = 0 : i64, tpu.core_type = #tpu.core_type<tc>, window_params = [{transform_indices = @transform_0, window_bounds = array<i64: 8, 128>}, {transform_indices = @transform_1, window_bounds = array<i64: 8, 128>}, {transform_indices = @transform_2, window_bounds = array<i64: 128, 128>}, {transform_indices = @transform_3, window_bounds = array<i64: 128, 128>}, {transform_indices = @transform_4, window_bounds = array<i64: 8, 128>}]} {
    %c0 = arith.constant 0 : index
    %c0_0 = arith.constant 0 : index
    %0 = vector.load %arg3[%c0, %c0_0] : memref<8x128xf32, #tpu.memory_space<vmem>>, vector<8x128xf32>
    %c0_1 = arith.constant 0 : index
    %c0_2 = arith.constant 0 : index
    %1 = vector.load %arg5[%c0_1, %c0_2] : memref<128x128xf32, #tpu.memory_space<vmem>>, vector<128x128xf32>
    %cst = arith.constant dense<0.000000e+00> : vector<8x128xf32>
    %2 = tpu.matmul %0, %1, %cst {dimension_numbers = #tpu.dot_dimension_numbers<[1], [0], [0], [1], [0, 0, 1, 1], [], []>} : vector<8x128xf32>, vector<128x128xf32>, vector<8x128xf32> -> vector<8x128xf32>
    %c0_3 = arith.constant 0 : index
    %c0_4 = arith.constant 0 : index
    %3 = vector.load %arg4[%c0_3, %c0_4] : memref<8x128xf32, #tpu.memory_space<vmem>>, vector<8x128xf32>
    %c0_5 = arith.constant 0 : index
    %c0_6 = arith.constant 0 : index
    %4 = vector.load %arg6[%c0_5, %c0_6] : memref<128x128xf32, #tpu.memory_space<vmem>>, vector<128x128xf32>
    %cst_7 = arith.constant dense<0.000000e+00> : vector<8x128xf32>
    %5 = tpu.matmul %3, %4, %cst_7 {dimension_numbers = #tpu.dot_dimension_numbers<[1], [0], [0], [1], [0, 0, 1, 1], [], []>} : vector<8x128xf32>, vector<128x128xf32>, vector<8x128xf32> -> vector<8x128xf32>
    %6 = arith.addf %2, %5 : vector<8x128xf32>
    %c0_8 = arith.constant 0 : index
    %c0_9 = arith.constant 0 : index
    %7 = vector.load %arg7[%c0_8, %c0_9] : memref<8x128xf32, #tpu.memory_space<vmem>>, vector<8x128xf32>
    tpu.vector_store %arg7[%c0_8, %c0_9], %6 {strides = array<i32>} : memref<8x128xf32, #tpu.memory_space<vmem>>, vector<8x128xf32>,
    return
  }
  func.func @transform_0(%arg0: i32, %arg1: i32, %arg2: i32) -> (i32, i32) {
    %c0_i32 = arith.constant 0 : i32
    return %arg0, %arg2 : i32, i32
  }
  func.func @transform_1(%arg0: i32, %arg1: i32, %arg2: i32) -> (i32, i32) {
    %c0_i32 = arith.constant 0 : i32
    return %arg0, %arg2 : i32, i32
  }
  func.func @transform_2(%arg0: i32, %arg1: i32, %arg2: i32) -> (i32, i32) {
    %c0_i32 = arith.constant 0 : i32
    return %arg2, %arg1 : i32, i32
  }
  func.func @transform_3(%arg0: i32, %arg1: i32, %arg2: i32) -> (i32, i32) {
    %c0_i32 = arith.constant 0 : i32
    return %arg2, %arg1 : i32, i32
  }
  func.func @transform_4(%arg0: i32, %arg1: i32, %arg2: i32) -> (i32, i32) {
    %c0_i32 = arith.constant 0 : i32
    return %arg0, %arg1 : i32, i32
  }
}

</mosaic_0001>

<bundles_post_ra>
// kernel: tpu_custom_call.1
= control target key start
LH: loop header
LB: loop body
LE: loop exit
PB: predicated region body
PF: predicated region fallthrough
CT: control target
= control target key end

     0   :  { %s1087_s0 = inlined_call_operand.hbm [shape: f32[16,128], index: 0, kind: input, shape index: {}]   ;;  %s1088_s1 = inlined_call_operand.hbm [shape: f32[16,128], index: 1, kind: input, shape index: {}]   ;;  %s1089_s2 = inlined_call_operand.hbm [shape: f32[128,128], index: 2, kind: input, shape index: {}]   ;;  %s1090_s3 = inlined_call_operand.hbm [shape: f32[128,128], index: 3, kind: input, shape index: {}]   ;;  %s1091_s4 = inlined_call_operand.hbm [shape: f32[16,128], index: 4, kind: output, shape index: {}]  }
   0x1   :  { %1094 = sst [smem:[#allocation19_spill]] %s1089_s2 }
   0x2   :  { %1095 = sst [smem:[#allocation20_spill]] %s1090_s3 }
   0x3   :  { %9 = vsyncpa [#allocation3], 0 }
   0x4   :  { %11 = vsyncpa [#allocation3 + $0x1], 0 }
   0x5   :  { %12 = vsyncpa [#allocation6], 0 }
   0x6   :  { %14 = vsyncpa [#allocation6 + $0x1], 0 }
   0x7   :  { %15 = vsyncpa [#allocation9], 0 }
   0x8   :  { %16 = vsyncpa [#allocation4], 0 }
   0x9   :  { %18 = vsyncpa [#allocation4 + $0x1], 0  ;;  %s919_s15 = smov 0   ;;  %s921_s16 = smov 0  }
   0xa   :  { %s923_s17 = smov 0   ;;  %s925_s18 = smov 0  }
   0xb   :  { %s927_s19 = smov 0   ;;  %s929_s20 = smov 0  }
   0xc LB: > { %1096 = sst [smem:[#allocation16_spill]] %s884_s19  ;;  %s950_s21 = sadd.s32 4294967295, %s888_s20   ;;  %s888_s20 = sphi %s929_s20, %s24_s20   ;;  %s884_s19 = sphi %s927_s19, %s1108_s19   ;;  %s880_s18 = sphi %s925_s18, %s1107_s18   ;;  %s876_s17 = sphi %s923_s17, %s1111_s17   ;;  %s872_s16 = sphi %s921_s16, %s1110_s16   ;;  %s868_s15 = sphi %s919_s15, %s1109_s15  }
   0xd   : > { %p566_p0 = scmp.ge.s32.totalorder %s888_s20, 1  ;;  %p66_p1 = scmp.eq.s32.totalorder %s950_s21, 0 }
   0xe   : > { %p188_p2 = scmp.lt.s32.totalorder %s888_s20, 3  ;;  %s1097_s2 = sld [smem:[#allocation19_spill]] }
   0xf   : > { %s890_s26 = smov [#allocation7]   ;;  %p569_p6 = scmp.ge.s32.totalorder %s888_s20, 2 }
  0x10   : > { %p958_p3 = pnand %p566_p0, %p188_p2  ;;  %s205_s27 = sshll.u32 %s890_s26, 4  ;;  %s206_s27 = int_to_ptr.vmem [resolvable:$true] %s205_s27 }
  0x11   : > { %s1099_s3 = sld [smem:[#allocation20_spill]]  ;;  %s891_s5 = smov 128  }
  0x12   : > { %p598_p4 = pneg %p958_p3  ;;  %s892_s6 = smov 8  }
  0x13   : > { %s893_s7 = smov [#allocation8]   ;;  %s565_s9 = sadd.s32 4294967294, %s888_s20  }
  0x14   : > { %s203_s24 = sshll.u32 %s1097_s2, 4  ;;  %p599_p5 = pnand %p598_p4, %p66_p1  ;;  %s204_s24 = int_to_ptr.hbm [resolvable:$true] %s203_s24 }
  0x15   : > { %s223_s8 = sshll.u32 %s893_s7, 4  ;;  %s43_s10 = sadd.s32 1, %s884_s19  ;;  %s224_s8 = int_to_ptr.vmem [resolvable:$true] %s223_s8 }
  0x16   : > { %601 = dma.hbm_to_vmem [thread:$0]  (!%p599_p5), %s204_s24, 2048, %s206_s27, [#allocation6], %s891_s5, %s891_s5, %s892_s6  }
  0x17   : > { %s221_s30 = sshll.u32 %s1099_s3, 4  ;;  %p45_p7 = scmp.ge.s32.totalorder %s43_s10, 2  ;;  %s222_s30 = int_to_ptr.hbm [resolvable:$true] %s221_s30 }
  0x18   : > { %604 = dma.hbm_to_vmem [thread:$0]  (!%p599_p5), %s222_s30, 2048, %s224_s8, [#allocation9], %s891_s5, %s891_s5, %s892_s6  }
  0x19   : > { %s52_s11 = sadd.s32 1, %s876_s17  ;;  %p59_p8 = scmp.ne.s32.totalorder %s876_s17, %s872_s16 }
  0x1a   : > { %p60_p9 = scmp.eq.s32.totalorder %s888_s20, 0  ;;  %s1113_s10 = smov (%p45_p7, %s43_s10), 0 }
  0x1b   : > { %1100 = sst [smem:[#allocation17_spill]] %s1113_s10  ;;  %p65_p11 = scmp.ne.s32.totalorder %s872_s16, %s868_s15 }
  0x1c   : > { %p978_p10 = por %p60_p9, %p59_p8  ;;  %s47_s13 = ssub.s32 %s884_s19, %s1113_s10 }
  0x1d   : > { %p175_p12 = scmp.eq.s32.totalorder %s950_s21, 1  ;;  %p50_p13 = scmp.eq.s32.totalorder %s47_s13, 0 }
  0x1e   : > { %p989_p0 = por %p66_p1, %p65_p11  ;;  %p181_p4 = scmp.eq.s32.totalorder %s565_s9, 1 }
  0x1f   : > { %p993_p2 = por %p175_p12, %p59_p8  ;;  %p618_p7 = scmp.lt.s32.totalorder %s888_s20, 2 }
  0x20   : > { %s998_s23 = scalar_select %p50_p13, %s876_s17, %s52_s11  }
  0x21   : > { %p1000_p5 = por %p181_p4, %p65_p11  ;;  %s237_s26 = sand.u32 1, %s876_s17  }
  0x22   : > { %1104 = sst [smem:[#allocation18_spill]] %s998_s23  ;;  %s571_s27 = sshll.u32 %s884_s19, 3 }
  0x23   : > { %s570_s28 = sshll.u32 %s237_s26, 3  ;;  %s246_s5 = scalar_lea.hbm %s1087_s0, %s571_s27 }
  0x24   : > { %s248_s6 = sshll.u32 %s246_s5, 4  ;;  %s241_s7 = scalar_lea.vmem [#allocation2], %s570_s28  ;;  %s249_s6 = int_to_ptr.hbm [resolvable:$true] %s248_s6 }
  0x25   : > { %s250_s8 = sshll.u32 %s241_s7, 4  ;;  %p606_p8 = pnand %p618_p7, %p978_p10  ;;  %s251_s8 = int_to_ptr.vmem [resolvable:$true] %s250_s8 }
  0x26   : > { %s266_s13 = scalar_lea.hbm %s1088_s1, %s571_s27  ;;  %s257_s2 = sand.u32 1, %s888_s20  }
  0x27   : > { %s238_s3 = scalar_lea.sflag [#allocation3], %s237_s26  ;;  %s268_s10 = sshll.u32 %s266_s13, 4  ;;  %s269_s10 = int_to_ptr.hbm [resolvable:$true] %s268_s10 }
  0x28   : > { %608 = dma.hbm_to_vmem [thread:$0]  (!%p606_p8), %s249_s6, 128, %s251_s8, %s238_s3  }
  0x29   : > { %s261_s19 = scalar_lea.vmem [#allocation5], %s570_s28  ;;  %s258_s29 = scalar_lea.sflag [#allocation6], %s257_s2 }
  0x2a   : > { %s270_s23 = sshll.u32 %s261_s19, 4  ;;  %279 = sbr.rel (%p958_p3) target bundleno = 219 (0xdb), region = 36  ;;  %s271_s23 = int_to_ptr.vmem [resolvable:$true] %s270_s23 }
  0x2b   : > { %611 = dma.hbm_to_vmem [thread:$0]  (!%p606_p8), %s269_s10, 128, %s271_s23, %s258_s29  }
  0x2c   : > { %s1019_s12 = sand.u32 (!%p958_p3), 1, %s872_s16  }
  0x2d   : > { %s1022_s27 = sshll.u32 (!%p958_p3), %s1019_s12, 3  ;;  %s282_s3 = scalar_lea.sflag (!%p958_p3), [#allocation3], %s1019_s12 }
  0x2e   : > { %s285_s26 = scalar_lea.vmem (!%p958_p3), [#allocation2], %s1022_s27 }
  0x2f   : > { %847 = dma.done.wait (%p989_p0), %s282_s3, 128  }
  0x30   : > { %849 = vsyncadd (%p989_p0), %s282_s3, 4294967168  ;;  %s291_s2 = sand.u32 1, %s950_s21   ;;  %s295_s25 = scalar_lea.vmem [#allocation5], %s1022_s27 }
  0x31   : > { %s292_s19 = scalar_lea.sflag [#allocation6], %s291_s2 }
  0x32   : > { %851 = dma.done.wait (%p989_p0), %s292_s19, 128  }
  0x33   : > { %853 = vsyncadd (%p989_p0), %s292_s19, 4294967168 }
  0x34   : > { %855 = dma.done.wait (%p66_p1), [#allocation6], 2048  }
  0x35   : > { %857 = vsyncadd (%p66_p1), [#allocation6], 4294965248 }
  0x36   : > { %859 = dma.done.wait (%p66_p1), [#allocation9], 2048  }
  0x37   : > { %861 = vsyncadd (%p66_p1), [#allocation9], 4294965248  ;;  %v371_v0 = vld [vmem:[#allocation8 + $0x78] sm:$0xff]  ;;  %v370_v2 = vld [vmem:[#allocation8 + $0x70] sm:$0xff]  ;;  %s581_s21 = sshll.u32 %s880_s18, 3  ;;  %s335_s28 = scalar_lea.vmem [#allocation10], %s1022_s27 }
  0x38   : > { %v354_v1 = vld [vmem:[#allocation7 + $0x78] sm:$0xff]  ;;  %372 = vmatpush.msra.mxu0 %v371_v0  ;;  %v353_v3 = vld [vmem:[#allocation7 + $0x70] sm:$0xff]  ;;  %v369_v4 = vld [vmem:[#allocation8 + $0x68] sm:$0xff]  ;;  %s425_s23 = scalar_lea.hbm %s1091_s4, %s581_s21  ;;  %s427_s30 = sshll.u32 %s335_s28, 4  ;;  %s428_s30 = int_to_ptr.vmem [resolvable:$true] %s427_s30 }
  0x39   : > { %392 = vmatpush.msra.mxu1 %v354_v1  ;;  %v352_v5 = vld [vmem:[#allocation7 + $0x68] sm:$0xff]  ;;  %v368_v6 = vld [vmem:[#allocation8 + $0x60] sm:$0xff]  ;;  %v367_v8 = vld [vmem:[#allocation8 + $0x58] sm:$0xff]  ;;  %s429_s5 = sshll.u32 %s425_s23, 4  ;;  %s414_s6 = scalar_lea.sflag [#allocation4], %s1019_s12  ;;  %s430_s5 = int_to_ptr.hbm [resolvable:$true] %s429_s5 }
  0x3a   : > { %373 = vmatpush.msra.mxu0 %v370_v2  ;;  %v351_v7 = vld [vmem:[#allocation7 + $0x60] sm:$0xff]  ;;  %v350_v9 = vld [vmem:[#allocation7 + $0x58] sm:$0xff]  ;;  %v366_v10 = vld [vmem:[#allocation8 + $0x50] sm:$0xff]  ;;  %s808_s7 = sshra.s32 %s430_s5, 4  ;;  %s814_s11 = scalar_lea.hbm %s1091_s4, 16  ;;  %s809_s7 = int_to_ptr.hbm [resolvable:$true] %s808_s7 }
  0x3b   : > { %393 = vmatpush.msra.mxu1 %v353_v3  ;;  %v349_v11 = vld [vmem:[#allocation7 + $0x50] sm:$0xff]  ;;  %v365_v12 = vld [vmem:[#allocation8 + $0x48] sm:$0xff]  ;;  %v364_v14 = vld [vmem:[#allocation8 + $0x40] sm:$0xff]  ;;  %s810_s8 = scalar_lea.hbm %s809_s7, 8  ;;  %p815_p10 = scmp.lt.s32.totalorder %s809_s7, %s1091_s4 }
  0x3c   : > { %374 = vmatpush.msra.mxu0 %v369_v4  ;;  %v348_v13 = vld [vmem:[#allocation7 + $0x48] sm:$0xff]  ;;  %v347_v15 = vld [vmem:[#allocation7 + $0x40] sm:$0xff]  ;;  %v363_v16 = vld [vmem:[#allocation8 + $0x38] sm:$0xff]  ;;  %p811_p1 = scmp.ne.s32.totalorder %s809_s7, %s810_s8  ;;  %p816_p11 = scmp.lt.s32.totalorder %s814_s11, %s810_s8 }
  0x3d   : > { %394 = vmatpush.msra.mxu1 %v352_v5  ;;  %v346_v17 = vld [vmem:[#allocation7 + $0x38] sm:$0xff]  ;;  %v362_v18 = vld [vmem:[#allocation8 + $0x30] sm:$0xff]  ;;  %v361_v20 = vld [vmem:[#allocation8 + $0x28] sm:$0xff] }
  0x3e   : > { %375 = vmatpush.msra.mxu0 %v368_v6  ;;  %v345_v19 = vld [vmem:[#allocation7 + $0x30] sm:$0xff]  ;;  %v344_v21 = vld [vmem:[#allocation7 + $0x28] sm:$0xff]  ;;  %v360_v22 = vld [vmem:[#allocation8 + $0x20] sm:$0xff]  ;;  %p812_p3 = pnand %p811_p1, %p993_p2  ;;  %p817_p12 = por %p816_p11, %p815_p10 }
  0x3f   : > { %395 = vmatpush.msra.mxu1 %v351_v7  ;;  %v343_v23 = vld [vmem:[#allocation7 + $0x20] sm:$0xff]  ;;  %v359_v24 = vld [vmem:[#allocation8 + $0x18] sm:$0xff]  ;;  %v358_v26 = vld [vmem:[#allocation8 + $0x10] sm:$0xff] }
  0x40   : > { %376 = vmatpush.msra.mxu0 %v367_v8  ;;  %v342_v25 = vld [vmem:[#allocation7 + $0x18] sm:$0xff]  ;;  %v341_v27 = vld [vmem:[#allocation7 + $0x10] sm:$0xff]  ;;  %v357_v28 = vld [vmem:[#allocation8 + $0x8] sm:$0xff]  ;;  %p813_p9 = pneg %p812_p3 }
  0x41   : > { %396 = vmatpush.msra.mxu1 %v350_v9  ;;  %v340_v29 = vld [vmem:[#allocation7 + $0x8] sm:$0xff]  ;;  %v356_v30 = vld [vmem:[#allocation8] sm:$0xff]  ;;  %v355_v32 = vld [vmem:[%s295_s25] sm:$0xff] }
  0x42   : > { %377 = vmatpush.msra.mxu0 %v366_v10  ;;  %v339_v31 = vld [vmem:[#allocation7] sm:$0xff]  ;;  %p818_p13 = pnand %p817_p12, %p813_p9 }
  0x43   : > { %397 = vmatpush.msra.mxu1 %v349_v11  ;;  %v338_v33 = vld [vmem:[%s285_s26] sm:$0xff] }
  0x44   : > { %378 = vmatpush.msra.mxu0 %v365_v12 }
  0x45   : > { %398 = vmatpush.msra.mxu1 %v348_v13 }
  0x46   : > { %379 = vmatpush.msra.mxu0 %v364_v14 }
  0x47   : > { %399 = vmatpush.msra.mxu1 %v347_v15 }
  0x48   : > { %380 = vmatpush.msra.mxu0 %v363_v16 }
  0x49   : > { %400 = vmatpush.msra.mxu1 %v346_v17 }
  0x4a   : > { %381 = vmatpush.msra.mxu0 %v362_v18 }
  0x4b   : > { %401 = vmatpush.msra.mxu1 %v345_v19 }
  0x4c   : > { %382 = vmatpush.msra.mxu0 %v361_v20 }
  0x4d   : > { %402 = vmatpush.msra.mxu1 %v344_v21 }
  0x4e   : > { %383 = vmatpush.msra.mxu0 %v360_v22 }
  0x4f   : > { %403 = vmatpush.msra.mxu1 %v343_v23 }
  0x50   : > { %384 = vmatpush.msra.mxu0 %v359_v24 }
  0x51   : > { %404 = vmatpush.msra.mxu1 %v342_v25 }
  0x52   : > { %385 = vmatpush.msra.mxu0 %v358_v26 }
  0x53   : > { %405 = vmatpush.msra.mxu1 %v341_v27 }
  0x54   : > { %386 = vmatpush.msra.mxu0 %v357_v28 }
  0x55   : > { %406 = vmatpush.msra.mxu1 %v340_v29 }
  0x56   : > { %387 = vmatpush.msra.mxu0 %v356_v30 }
  0x57   : > { %407 = vmatpush.msra.mxu1 %v339_v31  ;;  %388 = vmatmul.f32.vlgmr.msra.gmra.mxu0 %v355_v32 }
  0x58   : > { %408 = vmatmul.f32.vlgmr.msra.gmra.mxu1 %v338_v33 }
  0xd4   : > { %v389_v34 = vpop.f32.mrf.mxu0 }
  0xd5   : > { %v409_v35 = vpop.f32.mrf.mxu1 }
  0xd6   : > { %v410_v36 = vadd.f32 %v409_v35, %v389_v34 }
  0xd8   : > { %412 = vst [vmem:[%s335_s28] sm:$0xff] %v410_v36 }
  0xd9   : > { %821 = shalt.err (!%p818_p13)
}
  0xda   : > { %596 = dma.vmem_to_hbm [thread:$0]  (%p993_p2), %s428_s30, 128, %s430_s5, %s414_s6  }
  0xdb PF: > { %s441_s12 = sand.u32 1, %s868_s15   ;;  %p613_p0 = pnand %p569_p6, %p1000_p5 }
  0xdc   : > { %s442_s27 = scalar_lea.sflag [#allocation4], %s441_s12 }
  0xdd   : > { %p614_p4 = pneg %p613_p0 }
  0xdf   : > { %863 = dma.done.wait (%p614_p4), %s442_s27, 128  }
  0xe0   : > { %865 = vsyncadd (%p614_p4), %s442_s27, 4294967168  ;;  %s24_s20 = sadd.s32 1, %s888_s20   ;;  %s1106_s3 = sld [smem:[#allocation18_spill]] }
  0xe1   : > { %p21_p7 = scmp.ge.s32.totalorder %s24_s20, 4   ;;  %s1107_s18 = sld [smem:[#allocation16_spill]] }
  0xe2   : > { %s1108_s19 = sld [smem:[#allocation17_spill]]  ;;  %s1109_s15 = smov %s872_s16 }
  0xe3   : > { %s1110_s16 = smov %s876_s17  ;;  %23 = sbr.rel (!%p21_p7) target bundleno = 12 (0xc), region = 104 }
  0xe6   : > { %s1111_s17 = smov %s1106_s3 }
  0xe8   :  { %448 = vsyncpa [#allocation3], 1 }
  0xe9   :  { %450 = vsyncpa [#allocation3 + $0x1], 1 }
  0xea   :  { %451 = vsyncpa [#allocation6], 1 }
  0xeb   :  { %453 = vsyncpa [#allocation6 + $0x1], 1 }
  0xec   :  { %454 = vsyncpa [#allocation9], 1 }
  0xed   :  { %455 = vsyncpa [#allocation4], 1 }
  0xee   :  { %457 = vsyncpa [#allocation4 + $0x1], 1 }

</bundles_post_ra>
